<compile_context>
chip_gen: v7x
topology: tpu7x:2x2x1
jax: 0.10.0
libtpu: 0.0.40
codegen_flags: <defaults>
</compile_context>

<pallas_src>
import functools

import jax
import jax.numpy as jnp
from jax import lax
from jax.experimental import pallas as pl
from jax.experimental.pallas import tpu as pltpu


def shift_conv2d0_pallas(x: jax.Array, w: jax.Array, b: jax.Array, n_div: int = 5) -> jax.Array:
    """Forward of ShiftConv2d0: conv2d(x, w*mask, bias=b, stride=1, padding=1)."""
    N, C, H, W = x.shape
    O = w.shape[0]
    HW = H * W
    g = C // n_div

    # --- effective 1x1 weights gathered from the masked 3x3 taps (tiny, wrapper side) ---
    parts = [
        w[:, 0 * g:1 * g, 1, 2],   # group 0: sample (i, j+1)
        w[:, 1 * g:2 * g, 1, 0],   # group 1: sample (i, j-1)
        w[:, 2 * g:3 * g, 2, 1],   # group 2: sample (i+1, j)
        w[:, 3 * g:4 * g, 0, 1],   # group 3: sample (i-1, j)
        w[:, 4 * g:, 1, 1],        # group 4: identity
    ]
    w_eff = jnp.concatenate(parts, axis=1).astype(x.dtype)        # (O, C)
    b2 = b.reshape(O, 1).astype(jnp.float32)                      # (O, 1)

    # column-within-row index for boundary masking of the flattened spatial axis
    jpos = jnp.tile(jnp.arange(W, dtype=jnp.int32), H).reshape(1, HW)

    # free, contiguous reshape (no HBM copy): NCHW -> (N, C, H*W)
    x3 = x.reshape(N, C, HW)

    def kernel(w_ref, b_ref, jpos_ref, x_ref, o_ref):
        xk = x_ref[0]                                             # (C, HW)
        if g > 0:
            jp = jpos_ref[...]                                    # (1, HW)
            col = lax.broadcasted_iota(jnp.int32, (1, HW), 1)     # flattened index
            last_col = jp == (W - 1)
            first_col = jp == 0
            last_row = col >= (HW - W)
            first_row = col < W

            # shifted copies of the whole slab (XLU rolls + VPU masks)
            s_r = jnp.where(last_col, 0, pltpu.roll(xk, shift=HW - 1, axis=1))  # x[i, j+1]
            s_l = jnp.where(first_col, 0, pltpu.roll(xk, shift=1, axis=1))      # x[i, j-1]
            s_d = jnp.where(last_row, 0, pltpu.roll(xk, shift=HW - W, axis=1))  # x[i+1, j]
            s_u = jnp.where(first_row, 0, pltpu.roll(xk, shift=W, axis=1))      # x[i-1, j]

            cidx = lax.broadcasted_iota(jnp.int32, (C, HW), 0)
            xs = jnp.where(cidx < g, s_r,
                 jnp.where(cidx < 2 * g, s_l,
                 jnp.where(cidx < 3 * g, s_d,
                 jnp.where(cidx < 4 * g, s_u, xk))))
        else:
            # degenerate C < n_div case: mask keeps only the center tap for all channels
            xs = xk

        acc = jnp.dot(w_ref[...], xs, preferred_element_type=jnp.float32)       # (O, HW)
        acc = acc + b_ref[...]
        o_ref[0] = acc.astype(o_ref.dtype)

    itemsize = jnp.dtype(x.dtype).itemsize
    block_bytes = (C * HW + O * HW) * itemsize + (O * C + O + HW) * 4
    vmem_limit_bytes = int(min(96 * 1024 * 1024, max(32 * 1024 * 1024, 4 * block_bytes)))

    out3 = pl.pallas_call(
        kernel,
        out_shape=jax.ShapeDtypeStruct((N, O, HW), x.dtype),
        grid_spec=pltpu.PrefetchScalarGridSpec(
            num_scalar_prefetch=0,
            grid=(N,),
            in_specs=[
                pl.BlockSpec((O, C), lambda n: (0, 0)),       # w_eff (resident)
                pl.BlockSpec((O, 1), lambda n: (0, 0)),       # bias
                pl.BlockSpec((1, HW), lambda n: (0, 0)),      # jpos
                pl.BlockSpec((1, C, HW), lambda n: (n, 0, 0)),
            ],
            out_specs=pl.BlockSpec((1, O, HW), lambda n: (n, 0, 0)),
        ),
        compiler_params=pltpu.CompilerParams(
            dimension_semantics=("parallel",),
            vmem_limit_bytes=vmem_limit_bytes,
        ),
    )(w_eff, b2, jpos, x3)

    return out3.reshape(N, O, H, W)


def _ref_forward(x, w, b, n_div=5):
    """Pure-JAX reference reproducing the PyTorch module exactly."""
    O, C = w.shape[0], w.shape[1]
    g = C // n_div
    m = jnp.zeros_like(w)
    m = m.at[:, 0 * g:1 * g, 1, 2].set(1.0)
    m = m.at[:, 1 * g:2 * g, 1, 0].set(1.0)
    m = m.at[:, 2 * g:3 * g, 2, 1].set(1.0)
    m = m.at[:, 3 * g:4 * g, 0, 1].set(1.0)
    m = m.at[:, 4 * g:, 1, 1].set(1.0)
    y = lax.conv_general_dilated(
        x, w * m, window_strides=(1, 1), padding=((1, 1), (1, 1)),
        dimension_numbers=("NCHW", "OIHW", "NCHW"))
    return y + b[None, :, None, None]


if __name__ == "__main__":
    key = jax.random.PRNGKey(0)
    k1, k2, k3 = jax.random.split(key, 3)

    # Small shapes consistent with the module: inp_channels divisible by n_div=5 so all
    # five shift groups are exercised.
    N, C, O, H, W = 2, 10, 8, 16, 16
    x = jax.random.normal(k1, (N, C, H, W), dtype=jnp.float32)
    w = jax.random.normal(k2, (O, C, 3, 3), dtype=jnp.float32) * 0.1
    b = jax.random.normal(k3, (O,), dtype=jnp.float32) * 0.1

    y = shift_conv2d0_pallas(x, w, b)
    y = jax.block_until_ready(y)

    y_ref = _ref_forward(x, w, b)
    assert y.shape == (N, O, H, W) and y.dtype == x.dtype
    err = float(jnp.max(jnp.abs(y - y_ref)))
    assert err < 1e-4, f"max abs err {err}"

    print("KERNEL_OK")
</pallas_src>

<mosaic_0001>
module attributes {stable_mosaic.version = 11 : i64} {
  func.func @kernel(%arg0: i32, %arg1: memref<8x10xf32, #tpu.memory_space<vmem>>, %arg2: memref<8x1xf32, #tpu.memory_space<vmem>>, %arg3: memref<1x256xi32, #tpu.memory_space<vmem>>, %arg4: memref<1x10x256xf32, #tpu.memory_space<vmem>>, %arg5: memref<1x8x256xf32, #tpu.memory_space<vmem>>) attributes {dimension_semantics = [#tpu.dimension_semantics<parallel>], iteration_bounds = array<i64: 2>, scalar_prefetch = 0 : i64, scratch_operands = 0 : i64, tpu.core_type = #tpu.core_type<tc>, window_params = [{pipeline_mode = #tpu.pipeline_mode<synchronous>, transform_indices = @transform_0, window_bounds = array<i64: 8, 10>}, {pipeline_mode = #tpu.pipeline_mode<synchronous>, transform_indices = @transform_1, window_bounds = array<i64: 8, 1>}, {pipeline_mode = #tpu.pipeline_mode<synchronous>, transform_indices = @transform_2, window_bounds = array<i64: 1, 256>}, {transform_indices = @transform_3, window_bounds = array<i64: 1, 10, 256>}, {transform_indices = @transform_4, window_bounds = array<i64: 1, 8, 256>}]} {
    %c0 = arith.constant 0 : index
    %c0_0 = arith.constant 0 : index
    %c0_1 = arith.constant 0 : index
    %0 = vector.load %arg4[%c0, %c0_0, %c0_1] : memref<1x10x256xf32, #tpu.memory_space<vmem>>, vector<1x10x256xf32>
    %1 = vector.shape_cast %0 : vector<1x10x256xf32> to vector<10x256xf32>
    %c0_2 = arith.constant 0 : index
    %c0_3 = arith.constant 0 : index
    %2 = vector.load %arg3[%c0_2, %c0_3] : memref<1x256xi32, #tpu.memory_space<vmem>>, vector<1x256xi32>
    %3 = tpu.iota {dimensions = array<i32: 1>} : vector<1x256xi32>
    %c15_i32 = arith.constant 15 : i32
    %4 = vector.broadcast %c15_i32 : i32 to vector<1x256xi32>
    %5 = arith.cmpi eq, %2, %4 : vector<1x256xi32>
    %c0_i32 = arith.constant 0 : i32
    %6 = vector.broadcast %c0_i32 : i32 to vector<1x256xi32>
    %7 = arith.cmpi eq, %2, %6 : vector<1x256xi32>
    %c240_i32 = arith.constant 240 : i32
    %8 = vector.broadcast %c240_i32 : i32 to vector<1x256xi32>
    %9 = arith.cmpi sge, %3, %8 : vector<1x256xi32>
    %c16_i32 = arith.constant 16 : i32
    %10 = vector.broadcast %c16_i32 : i32 to vector<1x256xi32>
    %11 = arith.cmpi slt, %3, %10 : vector<1x256xi32>
    %c255_i32 = arith.constant 255 : i32
    %12 = tpu.dynamic_rotate %1 by %c255_i32 dim 1 : vector<10x256xf32>, i32 -> vector<10x256xf32>
    %c0_i32_4 = arith.constant 0 : i32
    %13 = arith.sitofp %c0_i32_4 : i32 to f32
    %14 = vector.shape_cast %5 : vector<1x256xi1> to vector<1x256xi1>
    %15 = vector.broadcast %14 : vector<1x256xi1> to vector<10x256xi1>
    %16 = vector.broadcast %13 : f32 to vector<10x256xf32>
    %17 = arith.select %15, %16, %12 : vector<10x256xi1>, vector<10x256xf32>
    %c1_i32 = arith.constant 1 : i32
    %18 = tpu.dynamic_rotate %1 by %c1_i32 dim 1 : vector<10x256xf32>, i32 -> vector<10x256xf32>
    %c0_i32_5 = arith.constant 0 : i32
    %19 = arith.sitofp %c0_i32_5 : i32 to f32
    %20 = vector.shape_cast %7 : vector<1x256xi1> to vector<1x256xi1>
    %21 = vector.broadcast %20 : vector<1x256xi1> to vector<10x256xi1>
    %22 = vector.broadcast %19 : f32 to vector<10x256xf32>
    %23 = arith.select %21, %22, %18 : vector<10x256xi1>, vector<10x256xf32>
    %c240_i32_6 = arith.constant 240 : i32
    %24 = tpu.dynamic_rotate %1 by %c240_i32_6 dim 1 : vector<10x256xf32>, i32 -> vector<10x256xf32>
    %c0_i32_7 = arith.constant 0 : i32
    %25 = arith.sitofp %c0_i32_7 : i32 to f32
    %26 = vector.shape_cast %9 : vector<1x256xi1> to vector<1x256xi1>
    %27 = vector.broadcast %26 : vector<1x256xi1> to vector<10x256xi1>
    %28 = vector.broadcast %25 : f32 to vector<10x256xf32>
    %29 = arith.select %27, %28, %24 : vector<10x256xi1>, vector<10x256xf32>
    %c16_i32_8 = arith.constant 16 : i32
    %30 = tpu.dynamic_rotate %1 by %c16_i32_8 dim 1 : vector<10x256xf32>, i32 -> vector<10x256xf32>
    %c0_i32_9 = arith.constant 0 : i32
    %31 = arith.sitofp %c0_i32_9 : i32 to f32
    %32 = vector.shape_cast %11 : vector<1x256xi1> to vector<1x256xi1>
    %33 = vector.broadcast %32 : vector<1x256xi1> to vector<10x256xi1>
    %34 = vector.broadcast %31 : f32 to vector<10x256xf32>
    %35 = arith.select %33, %34, %30 : vector<10x256xi1>, vector<10x256xf32>
    %36 = tpu.iota {dimensions = array<i32: 0>} : vector<10x256xi32>
    %c2_i32 = arith.constant 2 : i32
    %37 = vector.broadcast %c2_i32 : i32 to vector<10x256xi32>
    %38 = arith.cmpi slt, %36, %37 : vector<10x256xi32>
    %c4_i32 = arith.constant 4 : i32
    %39 = vector.broadcast %c4_i32 : i32 to vector<10x256xi32>
    %40 = arith.cmpi slt, %36, %39 : vector<10x256xi32>
    %c6_i32 = arith.constant 6 : i32
    %41 = vector.broadcast %c6_i32 : i32 to vector<10x256xi32>
    %42 = arith.cmpi slt, %36, %41 : vector<10x256xi32>
    %c8_i32 = arith.constant 8 : i32
    %43 = vector.broadcast %c8_i32 : i32 to vector<10x256xi32>
    %44 = arith.cmpi slt, %36, %43 : vector<10x256xi32>
    %45 = arith.select %44, %35, %1 : vector<10x256xi1>, vector<10x256xf32>
    %46 = arith.select %42, %29, %45 : vector<10x256xi1>, vector<10x256xf32>
    %47 = arith.select %40, %23, %46 : vector<10x256xi1>, vector<10x256xf32>
    %48 = arith.select %38, %17, %47 : vector<10x256xi1>, vector<10x256xf32>
    %c0_10 = arith.constant 0 : index
    %c0_11 = arith.constant 0 : index
    %49 = vector.load %arg1[%c0_10, %c0_11] : memref<8x10xf32, #tpu.memory_space<vmem>>, vector<8x10xf32>
    %cst = arith.constant dense<0.000000e+00> : vector<8x256xf32>
    %50 = tpu.matmul %49, %48, %cst {dimension_numbers = #tpu.dot_dimension_numbers<[1], [0], [0], [1], [0, 0, 1, 1], [], []>} : vector<8x10xf32>, vector<10x256xf32>, vector<8x256xf32> -> vector<8x256xf32>
    %c0_12 = arith.constant 0 : index
    %c0_13 = arith.constant 0 : index
    %51 = vector.load %arg2[%c0_12, %c0_13] : memref<8x1xf32, #tpu.memory_space<vmem>>, vector<8x1xf32>
    %52 = vector.broadcast %51 : vector<8x1xf32> to vector<8x256xf32>
    %53 = arith.addf %50, %52 : vector<8x256xf32>
    %c0_14 = arith.constant 0 : index
    %c0_15 = arith.constant 0 : index
    %c0_16 = arith.constant 0 : index
    %54 = vector.load %arg5[%c0_14, %c0_15, %c0_16] : memref<1x8x256xf32, #tpu.memory_space<vmem>>, vector<1x8x256xf32>
    %55 = vector.shape_cast %54 : vector<1x8x256xf32> to vector<8x256xf32>
    %56 = vector.shape_cast %53 : vector<8x256xf32> to vector<1x8x256xf32>
    tpu.vector_store %arg5[%c0_14, %c0_15, %c0_16], %56 {strides = array<i32>} : memref<1x8x256xf32, #tpu.memory_space<vmem>>, vector<1x8x256xf32>,
    return
  }
  func.func @transform_0(%arg0: i32) -> (i32, i32) {
    %c0_i32 = arith.constant 0 : i32
    %c0_i32_0 = arith.constant 0 : i32
    %c0_i32_1 = arith.constant 0 : i32
    return %c0_i32, %c0_i32_0 : i32, i32
  }
  func.func @transform_1(%arg0: i32) -> (i32, i32) {
    %c0_i32 = arith.constant 0 : i32
    %c0_i32_0 = arith.constant 0 : i32
    %c0_i32_1 = arith.constant 0 : i32
    return %c0_i32, %c0_i32_0 : i32, i32
  }
  func.func @transform_2(%arg0: i32) -> (i32, i32) {
    %c0_i32 = arith.constant 0 : i32
    %c0_i32_0 = arith.constant 0 : i32
    %c0_i32_1 = arith.constant 0 : i32
    return %c0_i32, %c0_i32_0 : i32, i32
  }
  func.func @transform_3(%arg0: i32) -> (i32, i32, i32) {
    %c0_i32 = arith.constant 0 : i32
    %c0_i32_0 = arith.constant 0 : i32
    %c0_i32_1 = arith.constant 0 : i32
    return %arg0, %c0_i32, %c0_i32_0 : i32, i32, i32
  }
  func.func @transform_4(%arg0: i32) -> (i32, i32, i32) {
    %c0_i32 = arith.constant 0 : i32
    %c0_i32_0 = arith.constant 0 : i32
    %c0_i32_1 = arith.constant 0 : i32
    return %arg0, %c0_i32, %c0_i32_0 : i32, i32, i32
  }
}

</mosaic_0001>

<bundles_post_ra>
// kernel: tpu_custom_call.1
= control target key start
LH: loop header
LB: loop body
LE: loop exit
PB: predicated region body
PF: predicated region fallthrough
CT: control target
= control target key end

     0   :  { %9 = vsyncpa [#allocation3], 0  ;;  %s832_s0 = inlined_call_operand.vmem [shape: f32[8,10], index: 0, kind: input, shape index: {}]   ;;  %s833_s1 = inlined_call_operand.vmem [shape: f32[8,1], index: 1, kind: input, shape index: {}]   ;;  %s834_s2 = inlined_call_operand.vmem [shape: s32[1,256], index: 2, kind: input, shape index: {}]   ;;  %s835_s3 = inlined_call_operand.vmem [shape: f32[2,10,256], index: 3, kind: input, shape index: {}]   ;;  %s836_s4 = inlined_call_operand.hbm [shape: f32[2,8,256], index: 4, kind: output, shape index: {}]  }
   0x1   :  { %11 = vsyncpa [#allocation3 + $0x1], 0  ;;  %s686_s15 = smov 0   ;;  %s688_s16 = smov 0  }
   0x2   :  { %s690_s17 = smov 0   ;;  %s692_s18 = smov 0  }
   0x3 LB: > { %s707_s19 = sadd.s32 4294967295, %s651_s18   ;;  %s499_s20 = sadd.s32 4294967294, %s651_s18   ;;  %s651_s18 = sphi %s692_s18, %s842_s18   ;;  %s647_s17 = sphi %s690_s17, %s841_s17   ;;  %s643_s16 = sphi %s688_s16, %s840_s16   ;;  %s639_s15 = sphi %s686_s15, %s839_s15  }
   0x4   : > { %s711_s21 = sadd.s32 1, %s651_s18   ;;  %s113_s22 = sadd.s32 1, %s647_s17 }
   0x5   : > { %s110_s23 = ssub.s32 %s651_s18, %s711_s21  ;;  %p123_p0 = scmp.ne.s32.totalorder %s647_s17, %s643_s16 }
   0x6   : > { %p111_p1 = scmp.eq.s32.totalorder %s110_s23, 0  ;;  %p124_p2 = scmp.eq.s32.totalorder %s707_s19, 1 }
   0x7   : > { %p129_p3 = scmp.ne.s32.totalorder %s643_s16, %s639_s15  ;;  %p130_p4 = scmp.eq.s32.totalorder %s499_s20, 1 }
   0x8   : > { %s722_s24 = scalar_select %p111_p1, %s647_s17, %s113_s22  }
   0x9   : > { %p724_p5 = por %p124_p2, %p123_p0  ;;  %p728_p6 = por %p130_p4, %p129_p3 }
   0xa   : > { %p502_p7 = scmp.ge.s32.totalorder %s651_s18, 1  ;;  %p165_p8 = scmp.lt.s32.totalorder %s651_s18, 3 }
   0xc   : > { %p166_p9 = pnand %p502_p7, %p165_p8 }
   0xd   : > { %p191_p10 = scmp.lt.s32.totalorder (!%p166_p9), %s707_s19, 1  ;;  %v653_v0 = vmov (!%p166_p9), 0   ;;  %s654_s6 = smov (!%p166_p9), 16   ;;  %v656_v4 = vmov (!%p166_p9), 0.0   ;;  %v335_v5 = vld [vmem:[%s833_s1] sm:$0xff] (!%p166_p9)  ;;  %v201_v6 = vlaneseq (!%p166_p9)  ;;  %vm345_vm11 = vcmask (!%p166_p9), 1041408  }
   0xe   : > { %169 = sbr.rel (%p166_p9) target bundleno = 388 (0x184), region = 36  ;;  %588 = vset.pattern.permute.xlu0 (!%p166_p9), %v653_v0  ;;  %s655_s7 = smov (!%p166_p9), 112   ;;  %416 = vmatprep.mubr.f32.mxu0 (!%p166_p9), %v656_v4  ;;  %v200_v7 = vld [vmem:[%s834_s2] sm:$0x3] (!%p166_p9)  ;;  %vm659_vm15 = vmmov (!%p166_p9), 1  }
   0xf   : > { %s657_s8 = smov (!%p166_p9), 1   ;;  %s658_s9 = smov (!%p166_p9), 127   ;;  %v749_v8 = vshrl.u32 (!%p166_p9), %v201_v6, 7  ;;  %v202_v9 = vand.u32 (!%p166_p9), 127, %v201_v6  ;;  %vm205_vm0 = vcmp.eq.s32.totalorder (!%p166_p9), %v200_v7, 0  ;;  %vm204_vm1 = vcmp.eq.s32.totalorder (!%p166_p9), %v200_v7, 15 }
  0x10   : > { %v251_v12 = vsel (!%p166_p9), %vm205_vm0, 1, %v653_v0  ;;  %v223_v14 = vsel (!%p166_p9), %vm204_vm1, 1, %v653_v0  ;;  %vm517_vm0 = vmpackc.low (!%p166_p9), %vm345_vm11, %vm659_vm15  ;;  %v334_v55 = vld [vmem:[%s832_s0] sm:$0xff] (!%p166_p9)  ;;  %vm341_vm1 = vcmask (!%p166_p9), 80896   ;;  %s188_s22 = sand.u32 (!%p166_p9), 1, %s643_s16  }
  0x11   : > { %v226_v10 = vsub.s32 (!%p166_p9), 0, %v749_v8  ;;  %v203_v11 = vadd.s32 (!%p166_p9), 128, %v202_v9  ;;  %v230_v13 = vsub.s32 (!%p166_p9), 1, %v749_v8  ;;  %vm208_vm2 = vcmp.lt.s32.totalorder (!%p166_p9), %v202_v9, 16  ;;  %s503_s23 = sshll.u32 (!%p166_p9), %s188_s22, 4 }
  0x12   : > { %vm274_vm3 = vcmp.lt.s32.totalorder (!%p166_p9), %v202_v9, 112  ;;  %vm314_vm4 = vcmp.lt.s32.totalorder (!%p166_p9), %v749_v8, 6  ;;  %vm246_vm6 = vcmp.lt.s32.totalorder (!%p166_p9), %v202_v9, 1  ;;  %vm218_vm7 = vcmp.lt.s32.totalorder (!%p166_p9), %v202_v9, 127 }
  0x13   : > { %v255_v15 = vrot.slane (!%p166_p9), %v251_v12, %v226_v10  ;;  %vm207_vm5 = vcmp.ge.s32.totalorder (!%p166_p9), %v203_v11, 240  ;;  %v259_v18 = vrot.slane (!%p166_p9), %v251_v12, %v230_v13  ;;  %v227_v23 = vrot.slane (!%p166_p9), %v223_v14, %v226_v10 }
  0x14   : > { %v231_v24 = vrot.slane (!%p166_p9), %v223_v14, %v230_v13  ;;  %vm310_vm8 = vcmp.lt.s32.totalorder (!%p166_p9), %v749_v8, 2  ;;  %vm312_vm9 = vcmp.lt.s32.totalorder (!%p166_p9), %v749_v8, 4 }
  0x15   : > { %s192_s27 = scalar_select %p191_p10, %s707_s19, 1  ;;  %vm260_vm10 = vcmp.eq.s32.totalorder %v255_v15, 1  ;;  %vm261_vm12 = vcmp.eq.s32.totalorder %v259_v18, 1  ;;  %vm232_vm13 = vcmp.eq.s32.totalorder %v227_v23, 1 }
  0x16   : > { %vm233_vm14 = vcmp.eq.s32.totalorder %v231_v24, 1 }
  0x17   : > { %s514_s28 = sshll.u32 %s192_s27, 5  ;;  %s515_s27 = sshll.u32 %s707_s19, 8 }
  0x18   : > { %s739_s5 = scalar_lea.vmem %s835_s3, %s514_s28  ;;  %s190_s28 = scalar_lea.vmem [#allocation2], %s503_s23 }
  0x19   : > { %v196_v1 = vld [vmem:[%s739_s5] sm:$0xff]  ;;  %v197_v2 = vld [vmem:[%s739_s5 + $0x8] sm:$0xff]  ;;  %v199_v44 = vld [vmem:[%s739_s5 + $0x18] sm:$0x3]  ;;  %s440_s29 = sshll.u32 %s190_s28, 4  ;;  %s792_s29 = int_to_ptr.vmem [resolvable:$true] %s440_s29 }
  0x1a   : > { %v578_v3 = vpack.i.bf16 %v197_v2, %v196_v1  ;;  %v198_v46 = vld [vmem:[%s739_s5 + $0x10] sm:$0x3]  ;;  %s589_s19 = scalar_lea.vmem %s792_s29, 256 }
  0x1b   : > { %p590_p11 = scmp.ne.s32.totalorder %s792_s29, %s589_s19 }
  0x1c   : > { %579 = vrot.lane.b32.xlu1 %v578_v3, %s654_s6  ;;  %569 = vrot.lane.b32.xlu0 %v578_v3, %s655_s7  ;;  %s790_s6 = scalar_lea.hbm %s836_s4, %s515_s27  ;;  %s426_s7 = scalar_lea.sflag [#allocation3], %s188_s22 }
  0x1d   : > { %p591_p12 = pnand %p590_p11, %p724_p5 }
  0x1f   : > { %p592_p13 = pneg %p591_p12 }
  0x20   : > { %574 = vrot.lane.b32.xlu0 %v578_v3, %s657_s8  ;;  %584 = vrot.lane.b32.xlu1 %v578_v3, %s658_s9  ;;  %s660_s8 = smov [#allocation2]  }
  0x21   : > { %s593_s9 = sshll.u32 %s660_s8, 4  ;;  %s594_s9 = int_to_ptr.vmem [resolvable:$false] %s593_s9 }
  0x22   : > { %s595_s10 = scalar_lea.vmem %s594_s9, 512  ;;  %p596_p0 = scmp.lt.s32.totalorder %s792_s29, %s594_s9 }
  0x23   : > { %p597_p1 = scmp.lt.s32.totalorder %s595_s10, %s589_s19 }
  0x24   : > { %338 = vperm.xlu0 %588, %v335_v5  }
  0x25   : > { %p598_p2 = por %p597_p1, %p596_p0 }
  0x27   : > { %p599_p3 = pnand %p598_p2, %p592_p13 }
  0x8e   : > { %v580_v16 = vpop.permute.xlu1 %579  ;;  %v570_v17 = vpop.permute.xlu0 %569 }
  0x8f   : > { %v582_v19 = vunpack.i.h.bf16 %v580_v16  ;;  %v581_v20 = vunpack.i.l.bf16 %v580_v16  ;;  %v572_v21 = vunpack.i.h.bf16 %v570_v17  ;;  %v571_v22 = vunpack.i.l.bf16 %v570_v17 }
  0x91   : > { %v297_v25 = vsel %vm208_vm2, %v582_v19, %v581_v20  ;;  %v277_v26 = vsel %vm274_vm3, %v572_v21, %v571_v22  ;;  %v295_v27 = vsel %vm208_vm2, %v581_v20, %v582_v19  ;;  %v275_v29 = vsel %vm274_vm3, %v571_v22, %v572_v21 }
  0x92   : > { %v303_v28 = vsel %vm208_vm2, 0.0, %v297_v25  ;;  %v284_v30 = vsel %vm207_vm5, 0.0, %v277_v26  ;;  %v575_v31 = vpop.permute.xlu0 %574  ;;  %v585_v32 = vpop.permute.xlu1 %584 }
  0x93   : > { %v577_v33 = vunpack.i.h.bf16 %v575_v31  ;;  %v576_v34 = vunpack.i.l.bf16 %v575_v31  ;;  %v587_v35 = vunpack.i.h.bf16 %v585_v32  ;;  %v586_v36 = vunpack.i.l.bf16 %v585_v32 }
  0x94   : > { %v322_v37 = vsel %vm314_vm4, %v275_v29, %v303_v28  ;;  %v323_v40 = vsel %vm314_vm4, %v284_v30, %v295_v27 }
  0x95   : > { %v247_v38 = vsel %vm246_vm6, %v576_v34, %v577_v33  ;;  %v249_v39 = vsel %vm246_vm6, %v577_v33, %v576_v34  ;;  %v219_v42 = vsel %vm218_vm7, %v586_v36, %v587_v35  ;;  %v221_v43 = vsel %vm218_vm7, %v587_v35, %v586_v36 }
  0x96   : > { %v262_v41 = vsel %vm260_vm10, 0.0, %v249_v39  ;;  %v263_v45 = vsel %vm261_vm12, 0.0, %v247_v38  ;;  %v234_v47 = vsel %vm232_vm13, 0.0, %v219_v42  ;;  %v235_v48 = vsel %vm233_vm14, 0.0, %v221_v43 }
  0x97   : > { %v327_v49 = vsel %vm312_vm9, %v263_v45, %v323_v40  ;;  %v326_v50 = vsel %vm312_vm9, %v262_v41, %v322_v37 }
  0x98   : > { %v331_v51 = vsel %vm310_vm8, %v235_v48, %v327_v49  ;;  %v330_v52 = vsel %vm310_vm8, %v234_v47, %v326_v50 }
  0x99   : > { %v516_v53 = vpack.c.bf16 %v199_v44, %v331_v51  ;;  %v519_v54 = vpack.c.bf16 %v198_v46, %v330_v52 }
  0x9b   : > { %518 = vmatprep.subr.msk.bf16.mxu0 %vm517_vm0, %v516_v53 }
  0x9c   : > { %521 = vmatpush1.bf16.msk.msra.mxu0 %vm517_vm0, %v519_v54 }
  0x9f   : > { %508 = vmatmul.mubr.msk.f32.vlgmr.msra.gmra.mrb[0].mxu0 %vm341_vm1, %v334_v55 }
  0xa3   : > { %v339_v56 = vpop.permute.xlu0 %338 }
 0x172   : > { %v418_v57 = vpop.f32.mrb[0].mxu0 }
 0x173   : > { %v419_v58 = vadd.f32 %v418_v57, %v339_v56  ;;  %v420_v59 = vpop.f32.mrb[1].mxu0 }
 0x174   : > { %v421_v60 = vadd.f32 %v420_v59, %v339_v56 }
 0x175   : > { %423 = vst [vmem:[%s190_s28] sm:$0xff] %v419_v58 }
 0x176   : > { %424 = vst [vmem:[%s190_s28 + $0x8] sm:$0xff] %v421_v60 }
 0x177   : > { %602 = shalt.err (!%p599_p3)
}
 0x178   : > { %s603_s11 = scalar_lea.hbm %s790_s6, 256  ;;  %s607_s14 = scalar_lea.hbm %s836_s4, 512 }
 0x179   : > { %p604_p4 = scmp.ne.s32.totalorder %s790_s6, %s603_s11  ;;  %p608_p9 = scmp.lt.u32.totalorder %s790_s6, %s836_s4 }
 0x17a   : > { %p609_p10 = scmp.lt.u32.totalorder %s607_s14, %s603_s11  ;;  %p611_p12 = scmp.lt.u32.totalorder %s603_s11, %s790_s6 }
 0x17b   : > { %p605_p7 = pnand %p604_p4, %p724_p5 }
 0x17c   : > { %p610_p11 = por %p609_p10, %p608_p9 }
 0x17d   : > { %p606_p8 = pneg %p605_p7 }
 0x17e   : > { %p612_p13 = por %p611_p12, %p610_p11 }
 0x180   : > { %p613_p0 = pnand %p612_p13, %p606_p8 }
 0x182   : > { %616 = shalt.err (!%p613_p0)
}
 0x183   : > { %522 = dma.vmem_to_hbm [thread:$0]  (%p724_p5), %s792_s29, 256, %s790_s6, %s426_s7  }
 0x184 PF: > { %p528_p1 = scmp.ge.s32.totalorder %s651_s18, 2  ;;  %s452_s23 = sand.u32 1, %s639_s15  }
 0x185   : > { %s453_s27 = scalar_lea.sflag [#allocation3], %s452_s23 }
 0x186   : > { %p525_p2 = pnand %p528_p1, %p728_p6 }
 0x188   : > { %634 = dma.done.wait (!%p525_p2), %s453_s27, 256  }
 0x189   : > { %636 = vsyncadd (!%p525_p2), %s453_s27, 4294967040  ;;  %p14_p3 = scmp.ge.s32.totalorder %s711_s21, 4   ;;  %s839_s15 = smov %s643_s16 }
 0x18a   : > { %s840_s16 = smov %s647_s17  ;;  %s841_s17 = smov %s722_s24 }
 0x18b   : > { %s842_s18 = smov %s711_s21  ;;  %16 = sbr.rel (!%p14_p3) target bundleno = 3 (0x3), region = 71 }
 0x192   :  { %458 = vsyncpa [#allocation3], 1 }
 0x193   :  { %460 = vsyncpa [#allocation3 + $0x1], 1 }

</bundles_post_ra>
